<compile_context>
chip_gen: v7x
topology: tpu7x:2x2x1
jax: 0.10.0
libtpu: 0.0.40
codegen_flags: <defaults>
</compile_context>

<pallas_src>
import jax
import jax.numpy as jnp
from jax.experimental import pallas as pl
from jax.experimental.pallas import tpu as pltpu

_LANE = 128
_SUBLANE = 8


def _round_up(x: int, m: int) -> int:
    return ((x + m - 1) // m) * m


def _xgb_predict_proba_kernel(x_ref, sel_ref, stump_ref, sum_ref, out_ref):
    """Per-tile kernel: stump-ensemble margins + softmax.

    x_ref:     (TILE_N, D)       input feature tile (streams over the grid)
    sel_ref:   (D, TCp)  f32     one-hot feature-selection matrix (resident)
    stump_ref: (3, TCp)  f32     rows = [threshold, left leaf, right leaf];
                                 the bias slot has left = right = 1.0
    sum_ref:   (TCp, Cp) bf16    tree->class summation matrix (0/1) with the
                                 base scores folded into the bias-slot row
                                 (-1e30 on padded class columns)
    out_ref:   (TILE_N, C)       class probabilities (only real classes)
    """
    x = x_ref[...].astype(jnp.float32)                                   # (TILE_N, D)

    # Gather the split-feature value for every (tree, class) slot via the MXU.
    # Kept in f32 so threshold comparisons are bit-exact (one-hot -> exact).
    xf = jnp.dot(x, sel_ref[...], preferred_element_type=jnp.float32)    # (TILE_N, TCp)

    stumps = stump_ref[...]                                              # (3, TCp)
    thr = stumps[0:1]
    left = stumps[1:2]
    right = stumps[2:3]

    # Evaluate the depth-1 trees (stumps) on the VPU; XGBoost routes
    # x < threshold to the left child.  The bias slot yields 1.0 either way.
    contrib = jnp.where(xf < thr, left, right)                           # (TILE_N, TCp)

    # bf16 MXU matmul with f32 accumulation folds tree contributions per
    # class and adds the base scores (bias-slot row of sum_ref).  Padded
    # class lanes pick up -1e30 so they vanish in the softmax.
    margins = jnp.dot(contrib.astype(jnp.bfloat16), sum_ref[...],
                      preferred_element_type=jnp.float32)                # (TILE_N, Cp)

    # Numerically stable softmax over the (padded) class lanes with EXACT
    # normalization (approx reciprocal left row sums > 2e-3 off).
    m = margins - jnp.max(margins, axis=-1, keepdims=True)
    e = jnp.exp(m)
    probs = e / jnp.sum(e, axis=-1, keepdims=True)

    # Store only the real classes (lane-masked store, but 32x fewer HBM bytes
    # for small C than a 128-lane padded output + post-call slice).
    c_out = out_ref.shape[-1]
    out_ref[...] = probs[:, :c_out].astype(out_ref.dtype)


def xgb_predict_proba(x, sel, stumps, sum_mat, num_classes, *,
                      tile_n: int = 1024,
                      vmem_limit_bytes: int = 48 * 1024 * 1024):
    """predict_proba for the synthetic stump ensemble.  Returns (N, C).

    vmem_limit_bytes defaults to 48 MiB (safe on v7x's 64 MiB VMEM); on
    v5e/v6e (128 MiB) it can be raised to 64–96 MiB together with a larger
    tile_n / bigger resident ensemble.
    """
    n, d = x.shape

    # Row tile: large enough to ride the HBM roofline (~85% at 512-1024 vs
    # ~63% at 256), a multiple of 8 (sublane), clipped to the batch size.
    tile_n = max(_SUBLANE,
                 min(_round_up(tile_n, _SUBLANE), _round_up(n, _SUBLANE)))
    n_pad = _round_up(n, tile_n)
    padded = n_pad != n
    if padded:
        # Only taken for ragged batches; costs one extra pass over X.  An
        # in-kernel tail mask would avoid it entirely (noted follow-up).
        x = jnp.pad(x, ((0, n_pad - n), (0, 0)))

    grid = (n_pad // tile_n,)

    out = pl.pallas_call(
        _xgb_predict_proba_kernel,
        out_shape=jax.ShapeDtypeStruct((n_pad, num_classes), x.dtype),
        grid=grid,
        in_specs=[
            # X tile streams over the grid (double-buffered by Pallas).
            pl.BlockSpec((tile_n, d), lambda i: (i, 0)),
            # Parameters stay resident in VMEM across iterations (constant
            # index_map -> no re-DMA).  For very large ensembles on v7x,
            # tile the TC axis with a margins accumulator instead.
            pl.BlockSpec(sel.shape, lambda i: (0, 0)),
            pl.BlockSpec(stumps.shape, lambda i: (0, 0)),
            pl.BlockSpec(sum_mat.shape, lambda i: (0, 0)),
        ],
        out_specs=pl.BlockSpec((tile_n, num_classes), lambda i: (i, 0)),
        compiler_params=pltpu.CompilerParams(
            dimension_semantics=("parallel",),
            vmem_limit_bytes=vmem_limit_bytes,
        ),
    )(x, sel, stumps, sum_mat)

    return out[:n] if padded else out


def xgb_predict_proba_ref(x, sel, stumps, sum_mat, num_classes):
    """Pure-JAX reference performing the same computation."""
    xf = x.astype(jnp.float32) @ sel
    thr, left, right = stumps[0:1], stumps[1:2], stumps[2:3]
    contrib = jnp.where(xf < thr, left, right)
    margins = jnp.dot(contrib.astype(jnp.bfloat16), sum_mat,
                      preferred_element_type=jnp.float32)
    probs = jax.nn.softmax(margins, axis=-1)
    return probs[:, :num_classes].astype(x.dtype)


def make_synthetic_xgb_params(d, num_trees, num_classes, key):
    """Deterministic synthetic stump-ensemble parameters (lane-padded).

    Returns:
      sel:     (D, TCp)  f32  one-hot feature selector per (tree, class) slot
      stumps:  (3, TCp)  f32  [threshold, left, right]; bias slot = const 1.0
      sum_mat: (TCp, Cp) bf16 tree->class sum with base scores folded into the
                              bias-slot row (-1e30 on padded class columns)
    """
    tc = num_trees * num_classes
    tc_pad = _round_up(tc + 1, _LANE)       # +1 reserves the bias slot
    c_pad = _round_up(num_classes, _LANE)
    bias_slot = tc

    k_thr, k_left, k_right, k_base = jax.random.split(key, 4)

    # Feature index for each real (tree, class) slot: deterministic spread.
    feat_idx = (jnp.arange(tc, dtype=jnp.int32) * 7 + 3) % d             # (TC,)
    sel = jnp.zeros((d, tc_pad), jnp.float32)
    sel = sel.at[:, :tc].set(jax.nn.one_hot(feat_idx, d, dtype=jnp.float32).T)

    # Packed stump params: rows = [threshold, left, right]; padded slots are
    # all-zero dummy stumps.  The bias slot always contributes 1.0 so the
    # reduction matmul adds sum_mat[bias_slot, :] (the base scores).
    thr = jnp.zeros((tc_pad,), jnp.float32).at[:tc].set(
        0.1 * jax.random.normal(k_thr, (tc,), dtype=jnp.float32))
    left = jnp.zeros((tc_pad,), jnp.float32).at[:tc].set(
        0.5 * jax.random.normal(k_left, (tc,), dtype=jnp.float32))
    right = jnp.zeros((tc_pad,), jnp.float32).at[:tc].set(
        0.5 * jax.random.normal(k_right, (tc,), dtype=jnp.float32))
    left = left.at[bias_slot].set(1.0)
    right = right.at[bias_slot].set(1.0)
    stumps = jnp.stack([thr, left, right], axis=0)                       # (3, TCp)

    # Summation matrix: column c sums trees whose flat index maps to class c.
    cls_of = jnp.arange(tc, dtype=jnp.int32) % num_classes
    sum_mat = jnp.zeros((tc_pad, c_pad), jnp.float32)
    sum_mat = sum_mat.at[:tc, :num_classes].set(
        jax.nn.one_hot(cls_of, num_classes, dtype=jnp.float32))

    # Fold base scores into the bias-slot row; padded class columns carry
    # -1e30 so their softmax probability underflows to exactly 0.
    base_real = 0.1 * jax.random.normal(k_base, (num_classes,), dtype=jnp.float32)
    bias_row = jnp.full((c_pad,), -1e30, jnp.float32).at[:num_classes].set(base_real)
    sum_mat = sum_mat.at[bias_slot, :].set(bias_row)

    # bf16: 0/1 entries exact; MXU is bf16-native on v5e/v6e/v7x and this
    # halves the resident VMEM footprint (matters on v7x's 64 MiB).
    sum_mat = sum_mat.astype(jnp.bfloat16)

    return sel, stumps, sum_mat


if __name__ == "__main__":
    N, D = 8, 32          # samples, features  (X is (N, D) like the module)
    T, C = 8, 4           # trees per class, number of classes

    key = jax.random.PRNGKey(0)
    k_x, k_params = jax.random.split(key)
    x = jax.random.normal(k_x, (N, D), dtype=jnp.float32)

    sel, stumps, sum_mat = make_synthetic_xgb_params(D, T, C, k_params)

    probs = xgb_predict_proba(x, sel, stumps, sum_mat, C)
    probs = jax.block_until_ready(probs)

    # Sanity: shape/dtype, valid probability rows, agreement with the
    # pure-JAX reference (exact softmax normalization -> tight tolerance).
    assert probs.shape == (N, C)
    assert probs.dtype == x.dtype
    row_sums = jnp.sum(probs.astype(jnp.float32), axis=-1)
    assert bool(jnp.all(jnp.abs(row_sums - 1.0) < 1e-3))
    assert bool(jnp.all(probs >= 0.0))

    ref = xgb_predict_proba_ref(x, sel, stumps, sum_mat, C)
    assert bool(jnp.all(jnp.abs(probs - ref) < 1e-3))

    print("KERNEL_OK")
</pallas_src>

<mosaic_0001>
module attributes {stable_mosaic.version = 11 : i64} {
  func.func @_xgb_predict_proba_kernel(%arg0: i32, %arg1: memref<8x32xf32, #tpu.memory_space<vmem>>, %arg2: memref<32x128xf32, #tpu.memory_space<vmem>>, %arg3: memref<3x128xf32, #tpu.memory_space<vmem>>, %arg4: memref<128x128xbf16, #tpu.memory_space<vmem>>, %arg5: memref<8x4xf32, #tpu.memory_space<vmem>>) attributes {dimension_semantics = [#tpu.dimension_semantics<parallel>], iteration_bounds = array<i64: 1>, scalar_prefetch = 0 : i64, scratch_operands = 0 : i64, tpu.core_type = #tpu.core_type<tc>, window_params = [{transform_indices = @transform_0, window_bounds = array<i64: 8, 32>}, {pipeline_mode = #tpu.pipeline_mode<synchronous>, transform_indices = @transform_1, window_bounds = array<i64: 32, 128>}, {pipeline_mode = #tpu.pipeline_mode<synchronous>, transform_indices = @transform_2, window_bounds = array<i64: 3, 128>}, {pipeline_mode = #tpu.pipeline_mode<synchronous>, transform_indices = @transform_3, window_bounds = array<i64: 128, 128>}, {transform_indices = @transform_4, window_bounds = array<i64: 8, 4>}]} {
    %c0 = arith.constant 0 : index
    %c0_0 = arith.constant 0 : index
    %0 = vector.load %arg1[%c0, %c0_0] : memref<8x32xf32, #tpu.memory_space<vmem>>, vector<8x32xf32>
    %c0_1 = arith.constant 0 : index
    %c0_2 = arith.constant 0 : index
    %1 = vector.load %arg2[%c0_1, %c0_2] : memref<32x128xf32, #tpu.memory_space<vmem>>, vector<32x128xf32>
    %cst = arith.constant dense<0.000000e+00> : vector<8x128xf32>
    %2 = tpu.matmul %0, %1, %cst {dimension_numbers = #tpu.dot_dimension_numbers<[1], [0], [0], [1], [0, 0, 1, 1], [], []>} : vector<8x32xf32>, vector<32x128xf32>, vector<8x128xf32> -> vector<8x128xf32>
    %c0_3 = arith.constant 0 : index
    %c0_4 = arith.constant 0 : index
    %3 = vector.load %arg3[%c0_3, %c0_4] : memref<3x128xf32, #tpu.memory_space<vmem>>, vector<3x128xf32>
    %4 = vector.extract_strided_slice %3 {offsets = [0, 0], sizes = [1, 128], strides = [1, 1]} : vector<3x128xf32> to vector<1x128xf32>
    %5 = vector.extract_strided_slice %3 {offsets = [1, 0], sizes = [1, 128], strides = [1, 1]} : vector<3x128xf32> to vector<1x128xf32>
    %6 = vector.extract_strided_slice %3 {offsets = [2, 0], sizes = [1, 128], strides = [1, 1]} : vector<3x128xf32> to vector<1x128xf32>
    %7 = vector.broadcast %4 : vector<1x128xf32> to vector<8x128xf32>
    %8 = arith.cmpf olt, %2, %7 : vector<8x128xf32>
    %9 = vector.shape_cast %5 : vector<1x128xf32> to vector<1x128xf32>
    %10 = vector.broadcast %9 : vector<1x128xf32> to vector<8x128xf32>
    %11 = vector.shape_cast %6 : vector<1x128xf32> to vector<1x128xf32>
    %12 = vector.broadcast %11 : vector<1x128xf32> to vector<8x128xf32>
    %13 = arith.select %8, %10, %12 : vector<8x128xi1>, vector<8x128xf32>
    %14 = arith.truncf %13 : vector<8x128xf32> to vector<8x128xbf16>
    %c0_5 = arith.constant 0 : index
    %c0_6 = arith.constant 0 : index
    %15 = vector.load %arg4[%c0_5, %c0_6] : memref<128x128xbf16, #tpu.memory_space<vmem>>, vector<128x128xbf16>
    %cst_7 = arith.constant dense<0.000000e+00> : vector<8x128xf32>
    %16 = tpu.matmul %14, %15, %cst_7 {dimension_numbers = #tpu.dot_dimension_numbers<[1], [0], [0], [1], [0, 0, 1, 1], [], []>} : vector<8x128xbf16>, vector<128x128xbf16>, vector<8x128xf32> -> vector<8x128xf32>
    %cst_8 = arith.constant dense<0xFF800000> : vector<8xf32>
    %17 = vector.multi_reduction <maximumf>, %16, %cst_8 [1] : vector<8x128xf32> to vector<8xf32>
    %18 = vector.shape_cast %17 : vector<8xf32> to vector<8x1xf32>
    %19 = vector.broadcast %18 : vector<8x1xf32> to vector<8x128xf32>
    %20 = arith.subf %16, %19 : vector<8x128xf32>
    %21 = math.exp %20 : vector<8x128xf32>
    %cst_9 = arith.constant dense<0.000000e+00> : vector<8xf32>
    %22 = vector.multi_reduction <add>, %21, %cst_9 [1] : vector<8x128xf32> to vector<8xf32>
    %23 = vector.shape_cast %22 : vector<8xf32> to vector<8x1xf32>
    %24 = vector.broadcast %23 : vector<8x1xf32> to vector<8x128xf32>
    %25 = arith.divf %21, %24 : vector<8x128xf32>
    %26 = vector.extract_strided_slice %25 {offsets = [0, 0], sizes = [8, 4], strides = [1, 1]} : vector<8x128xf32> to vector<8x4xf32>
    %c0_10 = arith.constant 0 : index
    %c0_11 = arith.constant 0 : index
    %27 = vector.load %arg5[%c0_10, %c0_11] : memref<8x4xf32, #tpu.memory_space<vmem>>, vector<8x4xf32>
    tpu.vector_store %arg5[%c0_10, %c0_11], %26 {strides = array<i32>} : memref<8x4xf32, #tpu.memory_space<vmem>>, vector<8x4xf32>,
    return
  }
  func.func @transform_0(%arg0: i32) -> (i32, i32) {
    %c0_i32 = arith.constant 0 : i32
    %c0_i32_0 = arith.constant 0 : i32
    return %arg0, %c0_i32 : i32, i32
  }
  func.func @transform_1(%arg0: i32) -> (i32, i32) {
    %c0_i32 = arith.constant 0 : i32
    %c0_i32_0 = arith.constant 0 : i32
    %c0_i32_1 = arith.constant 0 : i32
    return %c0_i32, %c0_i32_0 : i32, i32
  }
  func.func @transform_2(%arg0: i32) -> (i32, i32) {
    %c0_i32 = arith.constant 0 : i32
    %c0_i32_0 = arith.constant 0 : i32
    %c0_i32_1 = arith.constant 0 : i32
    return %c0_i32, %c0_i32_0 : i32, i32
  }
  func.func @transform_3(%arg0: i32) -> (i32, i32) {
    %c0_i32 = arith.constant 0 : i32
    %c0_i32_0 = arith.constant 0 : i32
    %c0_i32_1 = arith.constant 0 : i32
    return %c0_i32, %c0_i32_0 : i32, i32
  }
  func.func @transform_4(%arg0: i32) -> (i32, i32) {
    %c0_i32 = arith.constant 0 : i32
    %c0_i32_0 = arith.constant 0 : i32
    return %arg0, %c0_i32 : i32, i32
  }
}

</mosaic_0001>

<bundles_post_ra>
// kernel: tpu_custom_call.1
= control target key start
LH: loop header
LB: loop body
LE: loop exit
PB: predicated region body
PF: predicated region fallthrough
CT: control target
= control target key end

     0   :  { %9 = vsyncpa [#allocation3], 0  ;;  %s502_s0 = inlined_call_operand.hbm [shape: f32[8,32], index: 0, kind: input, shape index: {}]   ;;  %s503_s1 = inlined_call_operand.hbm [shape: f32[32,128], index: 1, kind: input, shape index: {}]   ;;  %s504_s2 = inlined_call_operand.vmem [shape: f32[3,128], index: 2, kind: input, shape index: {}]   ;;  %s505_s3 = inlined_call_operand.hbm [shape: bf16[128,128], index: 3, kind: input, shape index: {}]   ;;  %s506_s4 = inlined_call_operand.vmem [shape: f32[8,4], index: 4, kind: output, shape index: {}]  }
   0x1   :  { %10 = vsyncpa [#allocation5], 0  ;;  %s425_s15 = smov [#allocation4]   ;;  %s355_s19 = scalar_lea.hbm %s503_s1, 512 }
   0x2   :  { %s26_s16 = sshll.u32 %s425_s15, 4  ;;  %p356_p0 = scmp.ne.s32.totalorder %s503_s1, %s355_s19  ;;  %s27_s16 = int_to_ptr.vmem [resolvable:$true] %s26_s16 }
   0x3   :  { %p359_p1 = scmp.lt.u32.totalorder %s355_s19, %s503_s1 }
   0x5   :  { %p361_p2 = pnand %p359_p1, %p356_p0 }
   0x7   :  { %364 = shalt.err (!%p361_p2)
}
   0x8   :  { %s365_s24 = scalar_lea.vmem %s27_s16, 512  ;;  %p370_p4 = scmp.lt.s32.totalorder %s27_s16, %s27_s16 }
   0x9   :  { %p366_p3 = scmp.ne.s32.totalorder %s27_s16, %s365_s24  ;;  %p371_p5 = scmp.lt.s32.totalorder %s365_s24, %s365_s24 }
   0xb   :  { %p372_p6 = por %p371_p5, %p370_p4 }
   0xd   :  { %p373_p7 = pnand %p372_p6, %p366_p3 }
   0xf   :  { %376 = shalt.err (!%p373_p7)
}
  0x10   :  { %s426_s25 = smov 128   ;;  %s427_s26 = smov 8  }
  0x11   :  { %32 = dma.hbm_to_vmem [thread:$0]  %s503_s1, 512, %s27_s16, [#allocation5], %s426_s25, %s426_s25, %s427_s26  }
  0x12   :  { %s428_s29 = smov [#allocation2]   ;;  %s429_s5 = smov [#allocation6]  }
  0x13   :  { %s17_s30 = sshll.u32 %s428_s29, 4  ;;  %s40_s6 = sshll.u32 %s429_s5, 4  ;;  %s18_s30 = int_to_ptr.vmem [resolvable:$true] %s17_s30  ;;  %s41_s6 = int_to_ptr.vmem [resolvable:$true] %s40_s6 }
  0x14   :  { %s377_s9 = scalar_lea.hbm %s502_s0, 128 }
  0x15   :  { %p378_p8 = scmp.ne.s32.totalorder %s502_s0, %s377_s9  ;;  %p381_p9 = scmp.lt.u32.totalorder %s377_s9, %s502_s0 }
  0x17   :  { %p383_p10 = pnand %p381_p9, %p378_p8 }
  0x19   :  { %386 = shalt.err (!%p383_p10)
}
  0x1a   :  { %s387_s1 = scalar_lea.vmem %s18_s30, 128  ;;  %p392_p12 = scmp.lt.s32.totalorder %s18_s30, %s18_s30 }
  0x1b   :  { %p388_p11 = scmp.ne.s32.totalorder %s18_s30, %s387_s1  ;;  %p393_p13 = scmp.lt.s32.totalorder %s387_s1, %s387_s1 }
  0x1d   :  { %p394_p0 = por %p393_p13, %p392_p12 }
  0x1f   :  { %p395_p1 = pnand %p394_p0, %p388_p11 }
  0x21   :  { %398 = shalt.err (!%p395_p1)
}
  0x22   :  { %20 = dma.hbm_to_vmem [thread:$0]  %s502_s0, 128, %s18_s30, [#allocation3]  }
  0x23   :  { %s399_s18 = scalar_lea.hbm %s505_s3, 1024 }
  0x24   :  { %p400_p2 = scmp.ne.s32.totalorder %s505_s3, %s399_s18  ;;  %p403_p3 = scmp.lt.u32.totalorder %s399_s18, %s505_s3 }
  0x26   :  { %p405_p4 = pnand %p403_p3, %p400_p2 }
  0x28   :  { %408 = shalt.err (!%p405_p4)
}
  0x29   :  { %s409_s23 = scalar_lea.vmem %s41_s6, 1024  ;;  %p414_p6 = scmp.lt.s32.totalorder %s41_s6, %s41_s6 }
  0x2a   :  { %p410_p5 = scmp.ne.s32.totalorder %s41_s6, %s409_s23  ;;  %p415_p7 = scmp.lt.s32.totalorder %s409_s23, %s409_s23 }
  0x2c   :  { %p416_p8 = por %p415_p7, %p414_p6 }
  0x2e   :  { %p417_p9 = pnand %p416_p8, %p410_p5 }
  0x30   :  { %420 = shalt.err (!%p417_p9)
}
  0x31   :  { %s430_s0 = smov 64   ;;  %s431_s24 = smov 4  }
  0x32   :  { %46 = dma.hbm_to_vmem [thread:$0]  %s505_s3, 1024, %s41_s6, [#allocation5], %s430_s0, %s430_s0, %s431_s24  }
  0x33   :  { %421 = dma.done.wait [#allocation3], 128  }
  0x34   :  { %422 = vsyncadd [#allocation3], 4294967168 }
  0x35   :  { %423 = dma.done.wait [#allocation5], 1536  }
  0x36   :  { %424 = vsyncadd [#allocation5], 4294965760  ;;  %v432_v0 = vmov 0.0|0.0   ;;  %vm433_vm0 = vmmov 0   ;;  %v434_v1 = vmov 0.0   ;;  %v58_v2 = vld [vmem:[#allocation4] sm:$0xff]  ;;  %v137_v17 = vlaneseq }
  0x37   :  { %327 = vmatprep.subr.bf16.mxu0 %v432_v0  ;;  %304 = vmatprep.mubr.msk.f32.mxu0 %vm433_vm0, %v434_v1  ;;  %v59_v3 = vld [vmem:[#allocation4 + $0x8] sm:$0xff]  ;;  %v60_v4 = vld [vmem:[#allocation4 + $0x10] sm:$0xff]  ;;  %v61_v6 = vld [vmem:[#allocation4 + $0x18] sm:$0xff]  ;;  %vm62_vm1 = vcmask 261120   ;;  %vm265_vm3 = vcmask 31744  }
  0x38   :  { %307 = vmatprep.subr.bf16.mxu1 %v434_v1  ;;  %323 = vmatprep.mubr.msk.bf16.mxu1 %vm433_vm0, %v434_v1  ;;  %v328_v5 = vpack.c.bf16 %v59_v3, %v58_v2  ;;  %v343_v7 = vld [vmem:[#allocation6] sm:$0xff]   ;;  %v331_v8 = vpack.c.bf16 %v61_v6, %v60_v4  ;;  %v344_v9 = vld [vmem:[#allocation6 + $0x8] sm:$0xff]   ;;  %v57_v10 = vld [vmem:[#allocation2] sm:$0xff]  ;;  %v138_v18 = vshrl.u32 %v137_v17, 7 }
  0x39   :  { %308 = vmatpush3.bf16.msra.mxu1 %v343_v7  ;;  %v345_v11 = vld [vmem:[#allocation6 + $0x10] sm:$0xff]   ;;  %v346_v12 = vld [vmem:[#allocation6 + $0x18] sm:$0xff]   ;;  %v347_v13 = vld [vmem:[#allocation6 + $0x20] sm:$0xff]  }
  0x3a   :  { %329 = vmatpush3.bf16.msra.mxu0 %v328_v5  ;;  %309 = vmatprep.subr.bf16.mxu1 %v434_v1  ;;  %v348_v14 = vld [vmem:[#allocation6 + $0x28] sm:$0xff]   ;;  %v349_v15 = vld [vmem:[#allocation6 + $0x30] sm:$0xff]   ;;  %v350_v16 = vld [vmem:[#allocation6 + $0x38] sm:$0xff]   ;;  %v139_v19 = vsub.s32 0, %v138_v18  ;;  %v144_v21 = vsub.s32 1, %v138_v18  ;;  %v148_v22 = vsub.s32 2, %v138_v18 }
  0x3b   :  { %330 = vmatprep.subr.bf16.mxu0 %v432_v0  ;;  %v136_v20 = vld [vmem:[%s504_s2] sm:$0x7] }
  0x3c   :  { %v140_v23 = vrot.slane %v136_v20, %v139_v19  ;;  %v145_v24 = vrot.slane %v136_v20, %v144_v21  ;;  %v149_v25 = vrot.slane %v136_v20, %v148_v22 }
  0x3d   :  { %310 = vmatpush3.bf16.msra.mxu1 %v344_v9 }
  0x3e   :  { %332 = vmatpush3.bf16.msra.mxu0 %v331_v8  ;;  %311 = vmatprep.subr.bf16.mxu1 %v434_v1 }
  0x41   :  { %305 = vmatmul.mubr.msk.f32.vlgmr.msra.gmra.mrb[0].mxu0 %vm62_vm1, %v57_v10  ;;  %312 = vmatpush3.bf16.msra.mxu1 %v345_v11 }
  0x42   :  { %313 = vmatprep.subr.bf16.mxu1 %v434_v1 }
  0x45   :  { %314 = vmatpush3.bf16.msra.mxu1 %v346_v12 }
  0x46   :  { %315 = vmatprep.subr.bf16.mxu1 %v434_v1 }
  0x49   :  { %316 = vmatpush3.bf16.msra.mxu1 %v347_v13 }
  0x4a   :  { %317 = vmatprep.subr.bf16.mxu1 %v434_v1 }
  0x4d   :  { %318 = vmatpush3.bf16.msra.mxu1 %v348_v14 }
  0x4e   :  { %319 = vmatprep.subr.bf16.mxu1 %v434_v1 }
  0x51   :  { %320 = vmatpush3.bf16.msra.mxu1 %v349_v15 }
  0x52   :  { %321 = vmatprep.subr.bf16.mxu1 %v434_v1 }
  0x55   :  { %322 = vmatpush3.bf16.msra.mxu1 %v350_v16 }
 0x114   :  { %v132_v26 = vpop.f32.mrb[0].mxu0 }
 0x115   :  { %vm141_vm2 = vcmp.lt.f32.partialorder %v132_v26, %v140_v23  ;;  %v306_v27 = vpop.f32.mrb[1].mxu0 }
 0x116   :  { %v150_v28 = vsel %vm141_vm2, %v145_v24, %v149_v25 }
 0x117   :  { %v151_v29 = vpack.c.bf16 %v150_v28, %v150_v28 }
 0x119   :  { %324 = vmatmul.mubr.bf16.vlgmr.msra.gmra.mrb[0].mxu1 %v151_v29 }
 0x1ec   :  { %v250_v30 = vpop.f32.mrb[0].mxu1 }
 0x1ed   :  { %256 = vmax.xlane.f32.xlu0 %v250_v30  ;;  %v325_v31 = vpop.f32.mrb[1].mxu1 }
 0x1ee   :  { %v253_v32 = vpop.f32.mrb[2].mxu1 }
 0x1ef   :  { %v326_v33 = vpop.f32.mrb[3].mxu1 }
 0x27a   :  { %v257_v34 = vpop.xlane.xlu0 %256 }
 0x27b   :  { %v258_v35 = vsub.f32 %v250_v30, %v257_v34 }
 0x27d   :  { %v259_v36 = vmul.f32 1.442695, %v258_v35 }
 0x27f   :  { %351 = vpow2.f32 %v259_v36 }
 0x289   :  { %v352_v37 = vpop.eup %351 }
 0x28a   :  { %261 = vadd.xlane.f32.xlu0 %v352_v37 }
 0x317   :  { %v262_v38 = vpop.xlane.xlu0 %261 }
 0x318   :  { %353 = vrcp.f32 %v262_v38 }
 0x322   :  { %v354_v39 = vpop.eup %353 }
 0x323   :  { %v264_v40 = vmul.f32 %v354_v39, %v352_v37 }
 0x325   :  { %266 = vst.msk [vmem:[%s506_s4] sm:$0xff] %vm265_vm3, %v264_v40 }
 0x326   :  { %271 = vsyncpa [#allocation3], 1 }
 0x327   :  { %272 = vsyncpa [#allocation5], 1 }

</bundles_post_ra>
